<compile_context>
chip_gen: v7x
topology: tpu7x:2x2x1
jax: 0.10.0
libtpu: 0.0.40
codegen_flags: <defaults>
</compile_context>

<pallas_src>
import functools
import math

import jax
import jax.numpy as jnp
from jax.experimental import pallas as pl
from jax.experimental.pallas import tpu as pltpu


def _pick_tile(dim, candidates):
    """Largest candidate that strictly subdivides dim, else the full dim."""
    for c in candidates:
        if dim > c and dim % c == 0:
            return c
    return dim


# ---------------------------------------------------------------------------
# Kernel 1: GroupNorm (+ optional Swish), per-batch block (G, Cg, HW)
# ---------------------------------------------------------------------------
def _gn_swish_kernel(x_ref, g_ref, b_ref, o_ref, *, eps, swish):
    x = x_ref[0].astype(jnp.float32)                       # (G, Cg, HW)
    inv_n = 1.0 / (x.shape[1] * x.shape[2])
    s = jnp.sum(jnp.sum(x, axis=2, keepdims=True), axis=1, keepdims=True)
    sq = jnp.sum(jnp.sum(x * x, axis=2, keepdims=True), axis=1, keepdims=True)
    mean = s * inv_n
    var = sq * inv_n - mean * mean                         # one-pass stats (f32)
    y = (x - mean) * jax.lax.rsqrt(var + eps)
    y = y * g_ref[...] + b_ref[...]                        # (G, Cg, 1) broadcast in-kernel
    if swish:
        y = y * jax.nn.sigmoid(y)
    o_ref[0] = y.astype(o_ref.dtype)


def group_norm_swish(x_bchw, gamma, beta, groups, *, swish, out_dtype, eps=1e-5):
    B, C, H, W = x_bchw.shape
    HW = H * W
    Cg = C // groups
    xg = x_bchw.reshape(B, groups, Cg, HW)
    g = gamma.reshape(groups, Cg, 1).astype(jnp.float32)
    b = beta.reshape(groups, Cg, 1).astype(jnp.float32)
    kern = functools.partial(_gn_swish_kernel, eps=eps, swish=swish)
    out = pl.pallas_call(
        kern,
        grid=(B,),
        in_specs=[pl.BlockSpec((1, groups, Cg, HW), lambda i: (i, 0, 0, 0)),
                  pl.BlockSpec((groups, Cg, 1), lambda i: (0, 0, 0)),
                  pl.BlockSpec((groups, Cg, 1), lambda i: (0, 0, 0))],
        out_specs=pl.BlockSpec((1, groups, Cg, HW), lambda i: (i, 0, 0, 0)),
        out_shape=jax.ShapeDtypeStruct((B, groups, Cg, HW), out_dtype),
        compiler_params=pltpu.CompilerParams(dimension_semantics=("parallel",)),
    )(xg, g, b)
    return out.reshape(B, C, H, W)


# ---------------------------------------------------------------------------
# Kernel 2: tiled channel-first matmul "conv":  out = W @ x + bias (+ add)
#   grid = (B, HW//TN, K//TK), f32 accumulator scratch, bf16 MXU operands.
# ---------------------------------------------------------------------------
def _mm_bias_kernel(x_ref, w_ref, b_ref, o_ref, acc_ref):
    @pl.when(pl.program_id(2) == 0)
    def _():
        acc_ref[...] = jnp.zeros_like(acc_ref)

    acc_ref[...] += jnp.dot(w_ref[...].astype(jnp.bfloat16),
                            x_ref[0].astype(jnp.bfloat16),
                            preferred_element_type=jnp.float32)

    @pl.when(pl.program_id(2) == pl.num_programs(2) - 1)
    def _():
        o_ref[0] = (acc_ref[...] + b_ref[0]).astype(o_ref.dtype)


def _mm_bias_add_kernel(x_ref, w_ref, b_ref, a_ref, o_ref, acc_ref):
    @pl.when(pl.program_id(2) == 0)
    def _():
        acc_ref[...] = jnp.zeros_like(acc_ref)

    acc_ref[...] += jnp.dot(w_ref[...].astype(jnp.bfloat16),
                            x_ref[0].astype(jnp.bfloat16),
                            preferred_element_type=jnp.float32)

    @pl.when(pl.program_id(2) == pl.num_programs(2) - 1)
    def _():
        o_ref[0] = (acc_ref[...] + b_ref[0] +
                    a_ref[0].astype(jnp.float32)).astype(o_ref.dtype)


def conv_matmul(x_bkhw, w, bias_per_batch, add=None, *, out_dtype):
    # x: (B, K, HW); w: (Cout, K) [bf16]; bias: (B, Cout, 1) f32; add: (B, Cout, HW) or None
    B, K, HW = x_bkhw.shape
    Cout = w.shape[0]
    TN = _pick_tile(HW, (512, 256, 128))
    TK = _pick_tile(K, (512, 256))
    grid = (B, HW // TN, K // TK)

    x_spec = pl.BlockSpec((1, TK, TN), lambda b, n, k: (b, k, n))
    w_spec = pl.BlockSpec((Cout, TK), lambda b, n, k: (0, k))
    b_spec = pl.BlockSpec((1, Cout, 1), lambda b, n, k: (b, 0, 0))
    o_spec = pl.BlockSpec((1, Cout, TN), lambda b, n, k: (b, 0, n))

    if add is None:
        kern, in_specs, args = _mm_bias_kernel, [x_spec, w_spec, b_spec], (x_bkhw, w, bias_per_batch)
    else:
        a_spec = pl.BlockSpec((1, Cout, TN), lambda b, n, k: (b, 0, n))
        kern = _mm_bias_add_kernel
        in_specs = [x_spec, w_spec, b_spec, a_spec]
        args = (x_bkhw, w, bias_per_batch, add)

    return pl.pallas_call(
        kern,
        grid=grid,
        in_specs=in_specs,
        out_specs=o_spec,
        out_shape=jax.ShapeDtypeStruct((B, Cout, HW), out_dtype),
        scratch_shapes=[pltpu.VMEM((Cout, TN), jnp.float32)],
        compiler_params=pltpu.CompilerParams(
            dimension_semantics=("parallel", "parallel", "arbitrary")),
    )(*args)


def _im2col_3x3(x_bchw):
    # XLA glue: gather 3x3 patches -> (B, 9*Cin, H*W), tap-major channel order.
    B, Cin, H, W = x_bchw.shape
    xp = jnp.pad(x_bchw, ((0, 0), (0, 0), (1, 1), (1, 1)))
    cols = [xp[:, :, dy:dy + H, dx:dx + W].reshape(B, Cin, H * W)
            for dy in range(3) for dx in range(3)]
    return jnp.concatenate(cols, axis=1)


# ---------------------------------------------------------------------------
# Kernel 3: fused c-conv + res-conv + h  :  out = Wc@c + Wr@x + (bc+br) + h
# ---------------------------------------------------------------------------
def _cres_kernel(c_ref, x_ref, h_ref, wc_ref, wr_ref, b_ref, o_ref):
    y = jnp.dot(wc_ref[...], c_ref[0].astype(jnp.bfloat16),
                preferred_element_type=jnp.float32)
    y = y + jnp.dot(wr_ref[...], x_ref[0].astype(jnp.bfloat16),
                    preferred_element_type=jnp.float32)
    o_ref[0] = (y + b_ref[0] + h_ref[0].astype(jnp.float32)).astype(o_ref.dtype)


def cres_fused(c_flat, x_flat, h_flat, wc, wr, bias, *, out_dtype):
    B, Cout, HW = c_flat.shape
    dim_in = x_flat.shape[1]
    TN = _pick_tile(HW, (512, 256, 128))
    grid = (B, HW // TN)
    return pl.pallas_call(
        _cres_kernel,
        grid=grid,
        in_specs=[pl.BlockSpec((1, Cout, TN), lambda b, n: (b, 0, n)),
                  pl.BlockSpec((1, dim_in, TN), lambda b, n: (b, 0, n)),
                  pl.BlockSpec((1, Cout, TN), lambda b, n: (b, 0, n)),
                  pl.BlockSpec((Cout, Cout), lambda b, n: (0, 0)),
                  pl.BlockSpec((Cout, dim_in), lambda b, n: (0, 0)),
                  pl.BlockSpec((1, Cout, 1), lambda b, n: (b, 0, 0))],
        out_specs=pl.BlockSpec((1, Cout, TN), lambda b, n: (b, 0, n)),
        out_shape=jax.ShapeDtypeStruct((B, Cout, HW), out_dtype),
        compiler_params=pltpu.CompilerParams(
            dimension_semantics=("parallel", "parallel")),
    )(c_flat, x_flat, h_flat, wc, wr, bias)


# ---------------------------------------------------------------------------
# Kernel 4: flash-style self-attention, per (batch, head), keys streamed
# ---------------------------------------------------------------------------
def _attn_flash_kernel(q_ref, k_ref, v_ref, o_ref, m_scr, l_scr, acc_scr, *, scale):
    kv = pl.program_id(2)

    @pl.when(kv == 0)
    def _():
        m_scr[...] = jnp.full_like(m_scr, -1e30)
        l_scr[...] = jnp.zeros_like(l_scr)
        acc_scr[...] = jnp.zeros_like(acc_scr)

    # pre-scale q (hd x HW) instead of the (TKV x HW) logits
    q = (q_ref[0].astype(jnp.float32) * scale).astype(jnp.bfloat16)   # (hd, HWq)
    k = k_ref[0]                                                      # (hd, TKV) bf16
    v = v_ref[0]                                                      # (hd, TKV) bf16

    # s[kv, q] = sum_c k[c, kv] * q[c, q]   -> softmax over the kv (sublane) axis
    s = jax.lax.dot_general(k, q, (((0,), (0,)), ((), ())),
                            preferred_element_type=jnp.float32)       # (TKV, HWq)
    m_prev = m_scr[...]
    m_new = jnp.maximum(m_prev, jnp.max(s, axis=0, keepdims=True))    # (1, HWq)
    alpha = jnp.exp(m_prev - m_new)
    p = jnp.exp(s - m_new)                                            # (TKV, HWq) f32
    l_scr[...] = alpha * l_scr[...] + jnp.sum(p, axis=0, keepdims=True)
    pv = jax.lax.dot_general(v, p.astype(jnp.bfloat16), (((1,), (0,)), ((), ())),
                             preferred_element_type=jnp.float32)      # (hd, HWq)
    acc_scr[...] = alpha * acc_scr[...] + pv
    m_scr[...] = m_new

    @pl.when(kv == pl.num_programs(2) - 1)
    def _():
        o_ref[0] = (acc_scr[...] *
                    pl.reciprocal(l_scr[...], approx=True)).astype(o_ref.dtype)


def attention_flash(qkv, n_head, hd, scale, *, out_dtype):
    # qkv: (B, 3*C, HW), channel layout per head: [q(hd), k(hd), v(hd)]
    B, C3, HW = qkv.shape
    C = C3 // 3
    TKV = _pick_tile(HW, (512, 256, 128))
    grid = (B, n_head, HW // TKV)
    q_spec = pl.BlockSpec((1, hd, HW), lambda b, n, kv: (b, 3 * n, 0))
    k_spec = pl.BlockSpec((1, hd, TKV), lambda b, n, kv: (b, 3 * n + 1, kv))
    v_spec = pl.BlockSpec((1, hd, TKV), lambda b, n, kv: (b, 3 * n + 2, kv))
    o_spec = pl.BlockSpec((1, hd, HW), lambda b, n, kv: (b, n, 0))
    return pl.pallas_call(
        functools.partial(_attn_flash_kernel, scale=scale),
        grid=grid,
        in_specs=[q_spec, k_spec, v_spec],
        out_specs=o_spec,
        out_shape=jax.ShapeDtypeStruct((B, C, HW), out_dtype),
        scratch_shapes=[pltpu.VMEM((1, HW), jnp.float32),
                        pltpu.VMEM((1, HW), jnp.float32),
                        pltpu.VMEM((hd, HW), jnp.float32)],
        compiler_params=pltpu.CompilerParams(
            dimension_semantics=("parallel", "parallel", "arbitrary")),
    )(qkv, qkv, qkv)


# ---------------------------------------------------------------------------
# Full forward: ResnetBlocWithAttn(dim, dim_out, with_attn=True)
# ---------------------------------------------------------------------------
def resnet_block_with_attn(x, time_emb, c, p, *, norm_groups, n_head, with_attn=True):
    B, dim, H, W = x.shape
    dim_out = p["conv1_w"].shape[0]
    HW = H * W
    f32, bf16 = jnp.float32, jnp.bfloat16

    # pre-cast weights for the MXU (one-time, small)
    w1 = jnp.transpose(p["conv1_w"], (0, 2, 3, 1)).reshape(dim_out, 9 * dim).astype(bf16)
    w2 = jnp.transpose(p["conv2_w"], (0, 2, 3, 1)).reshape(dim_out, 9 * dim_out).astype(bf16)
    wc = p["c_w"].astype(bf16)
    wr = p["res_w"].astype(bf16)
    wqkv = p["qkv_w"].astype(bf16)
    wout = p["out_w"].astype(bf16)

    # tiny noise-level Linear in plain JAX, folded into conv1's per-batch bias
    t_lin = time_emb.astype(f32) @ p["lin_w"].astype(f32) + p["lin_b"]
    bias1 = (p["conv1_b"][None, :, None] + t_lin[:, :, None]).astype(f32)        # (B, dim_out, 1)
    bias2 = jnp.broadcast_to(p["conv2_b"][None, :, None], (B, dim_out, 1)).astype(f32)
    bias_cr = jnp.broadcast_to((p["c_b"] + p["res_b"])[None, :, None], (B, dim_out, 1)).astype(f32)

    # ---- ResnetBlock ----
    h = group_norm_swish(x, p["gn1_g"], p["gn1_b"], norm_groups, swish=True, out_dtype=bf16)
    h = conv_matmul(_im2col_3x3(h), w1, bias1, out_dtype=bf16)                   # (B, dim_out, HW)

    h = group_norm_swish(h.reshape(B, dim_out, H, W), p["gn2_g"], p["gn2_b"],
                         norm_groups, swish=True, out_dtype=bf16)
    h = conv_matmul(_im2col_3x3(h), w2, bias2, out_dtype=bf16)                   # (B, dim_out, HW)

    # fused: out_res = Wc@c + Wr@x + (bc+br) + h
    out_res = cres_fused(c.reshape(B, dim_out, HW), x.reshape(B, dim, HW), h,
                         wc, wr, bias_cr, out_dtype=f32)                         # (B, dim_out, HW)

    if not with_attn:
        return out_res.reshape(B, dim_out, H, W)

    # ---- SelfAttention ----
    ch = dim_out
    hd = ch // n_head
    normed = group_norm_swish(out_res.reshape(B, ch, H, W), p["gna_g"], p["gna_b"],
                              norm_groups, swish=False, out_dtype=bf16)
    zero_b_qkv = jnp.zeros((B, 3 * ch, 1), f32)                                  # qkv conv has bias=False
    qkv = conv_matmul(normed.reshape(B, ch, HW), wqkv, zero_b_qkv, out_dtype=bf16)
    attn_out = attention_flash(qkv, n_head, hd, 1.0 / math.sqrt(ch), out_dtype=bf16)
    bias_o = jnp.broadcast_to(p["out_b"][None, :, None], (B, ch, 1)).astype(f32)
    final = conv_matmul(attn_out, wout, bias_o, add=out_res, out_dtype=f32)      # + residual
    return final.reshape(B, ch, H, W)


# ---------------------------------------------------------------------------
# Deterministic parameter init (shapes follow the PyTorch module __init__)
# ---------------------------------------------------------------------------
def init_params(key, dim, dim_out, noise_dim):
    ks = jax.random.split(key, 20)
    n = lambda k, s, sc=0.1: sc * jax.random.normal(k, s, dtype=jnp.float32)
    return {
        "gn1_g": 1.0 + n(ks[0], (dim,)),
        "gn1_b": n(ks[1], (dim,)),
        "conv1_w": n(ks[2], (dim_out, dim, 3, 3)),
        "conv1_b": n(ks[3], (dim_out,)),
        "lin_w": n(ks[4], (noise_dim, dim_out)),
        "lin_b": n(ks[5], (dim_out,)),
        "gn2_g": 1.0 + n(ks[6], (dim_out,)),
        "gn2_b": n(ks[7], (dim_out,)),
        "conv2_w": n(ks[8], (dim_out, dim_out, 3, 3)),
        "conv2_b": n(ks[9], (dim_out,)),
        "c_w": n(ks[10], (dim_out, dim_out)),
        "c_b": n(ks[11], (dim_out,)),
        "res_w": n(ks[12], (dim_out, dim)),
        "res_b": n(ks[13], (dim_out,)),
        "gna_g": 1.0 + n(ks[14], (dim_out,)),
        "gna_b": n(ks[15], (dim_out,)),
        "qkv_w": n(ks[16], (3 * dim_out, dim_out)),   # bias=False in PyTorch
        "out_w": n(ks[17], (dim_out, dim_out)),
        "out_b": n(ks[18], (dim_out,)),
    }


# ---------------------------------------------------------------------------
# Pure-JAX f32 reference (mirrors the PyTorch forward) for correctness check.
# ---------------------------------------------------------------------------
def _ref_forward(x, time_emb, c, p, *, groups, n_head):
    eps = 1e-5

    def gn(t, g, b):
        B, C, H, W = t.shape
        tg = t.reshape(B, groups, -1)
        m = tg.mean(axis=2, keepdims=True)
        v = ((tg - m) ** 2).mean(axis=2, keepdims=True)
        tn = ((tg - m) / jnp.sqrt(v + eps)).reshape(B, C, H, W)
        return tn * g.reshape(1, C, 1, 1) + b.reshape(1, C, 1, 1)

    swish = lambda t: t * jax.nn.sigmoid(t)

    def conv(t, w, b, pad):
        y = jax.lax.conv_general_dilated(
            t, w, (1, 1), ((pad, pad), (pad, pad)),
            dimension_numbers=("NCHW", "OIHW", "NCHW"))
        return y if b is None else y + b.reshape(1, -1, 1, 1)

    # ResnetBlock
    h = conv(swish(gn(x, p["gn1_g"], p["gn1_b"])), p["conv1_w"], p["conv1_b"], 1)
    t_lin = time_emb @ p["lin_w"] + p["lin_b"]
    h = h + t_lin[:, :, None, None]
    h = conv(swish(gn(h, p["gn2_g"], p["gn2_b"])), p["conv2_w"], p["conv2_b"], 1)
    h = conv(c, p["c_w"][:, :, None, None], p["c_b"], 0) + h
    h = h + conv(x, p["res_w"][:, :, None, None], p["res_b"], 0)

    # SelfAttention
    B, C, H, W = h.shape
    hd = C // n_head
    normed = gn(h, p["gna_g"], p["gna_b"])
    qkv = conv(normed, p["qkv_w"][:, :, None, None], None, 0)
    qkv = qkv.reshape(B, n_head, 3 * hd, H, W)
    q, k, v = qkv[:, :, :hd], qkv[:, :, hd:2 * hd], qkv[:, :, 2 * hd:]
    attn = jnp.einsum("bnchw,bncyx->bnhwyx", q, k) / math.sqrt(C)
    attn = attn.reshape(B, n_head, H, W, H * W)
    attn = jax.nn.softmax(attn, axis=-1)
    attn = attn.reshape(B, n_head, H, W, H, W)
    out = jnp.einsum("bnhwyx,bncyx->bnchw", attn, v)
    out = conv(out.reshape(B, C, H, W), p["out_w"][:, :, None, None], p["out_b"], 0)
    return out + h


if __name__ == "__main__":
    B, dim, dim_out = 2, 8, 16
    H = W = 16                       # HW = 256 -> exercises the 128-wide HW / kv tiling
    noise_dim = 32
    norm_groups = 4
    n_head = 2

    key = jax.random.PRNGKey(0)
    kx, kt, kc, kp = jax.random.split(key, 4)
    x = jax.random.normal(kx, (B, dim, H, W), dtype=jnp.float32)
    time_emb = jax.random.normal(kt, (B, noise_dim), dtype=jnp.float32)
    c = jax.random.normal(kc, (B, dim_out, H, W), dtype=jnp.float32)
    params = init_params(kp, dim, dim_out, noise_dim)

    out = resnet_block_with_attn(x, time_emb, c, params,
                                 norm_groups=norm_groups, n_head=n_head,
                                 with_attn=True)
    out = jax.block_until_ready(out)

    ref = _ref_forward(x, time_emb, c, params, groups=norm_groups, n_head=n_head)
    assert out.shape == (B, dim_out, H, W)
    err = float(jnp.max(jnp.abs(out - ref)))
    scale = float(jnp.max(jnp.abs(ref)))
    assert jnp.isfinite(out).all(), "non-finite output"
    # bf16 MXU operands + bf16 internal activations -> relative tolerance
    assert err <= 5e-2 * scale + 1e-3, f"max abs error {err} (ref scale {scale})"
    print("KERNEL_OK")
</pallas_src>

<mosaic_0001>
module attributes {stable_mosaic.version = 11 : i64} {
  func.func @_gn_swish_kernel(%arg0: i32, %arg1: memref<1x4x2x256xf32, #tpu.memory_space<vmem>>, %arg2: memref<4x2x1xf32, #tpu.memory_space<vmem>>, %arg3: memref<4x2x1xf32, #tpu.memory_space<vmem>>, %arg4: memref<1x4x2x256xbf16, #tpu.memory_space<vmem>>) attributes {dimension_semantics = [#tpu.dimension_semantics<parallel>], iteration_bounds = array<i64: 2>, scalar_prefetch = 0 : i64, scratch_operands = 0 : i64, tpu.core_type = #tpu.core_type<tc>, window_params = [{transform_indices = @transform_0, window_bounds = array<i64: 1, 4, 2, 256>}, {pipeline_mode = #tpu.pipeline_mode<synchronous>, transform_indices = @transform_1, window_bounds = array<i64: 4, 2, 1>}, {pipeline_mode = #tpu.pipeline_mode<synchronous>, transform_indices = @transform_2, window_bounds = array<i64: 4, 2, 1>}, {transform_indices = @transform_3, window_bounds = array<i64: 1, 4, 2, 256>}]} {
    %c0 = arith.constant 0 : index
    %c0_0 = arith.constant 0 : index
    %c0_1 = arith.constant 0 : index
    %c0_2 = arith.constant 0 : index
    %0 = vector.load %arg1[%c0, %c0_0, %c0_1, %c0_2] : memref<1x4x2x256xf32, #tpu.memory_space<vmem>>, vector<1x4x2x256xf32>
    %1 = vector.shape_cast %0 : vector<1x4x2x256xf32> to vector<4x2x256xf32>
    %cst = arith.constant dense<0.000000e+00> : vector<4x2xf32>
    %2 = vector.multi_reduction <add>, %1, %cst [2] : vector<4x2x256xf32> to vector<4x2xf32>
    %3 = vector.shape_cast %2 : vector<4x2xf32> to vector<4x2x1xf32>
    %cst_3 = arith.constant dense<0.000000e+00> : vector<4x1xf32>
    %4 = vector.multi_reduction <add>, %3, %cst_3 [1] : vector<4x2x1xf32> to vector<4x1xf32>
    %5 = vector.shape_cast %4 : vector<4x1xf32> to vector<4x1x1xf32>
    %6 = arith.mulf %1, %1 : vector<4x2x256xf32>
    %cst_4 = arith.constant dense<0.000000e+00> : vector<4x2xf32>
    %7 = vector.multi_reduction <add>, %6, %cst_4 [2] : vector<4x2x256xf32> to vector<4x2xf32>
    %8 = vector.shape_cast %7 : vector<4x2xf32> to vector<4x2x1xf32>
    %cst_5 = arith.constant dense<0.000000e+00> : vector<4x1xf32>
    %9 = vector.multi_reduction <add>, %8, %cst_5 [1] : vector<4x2x1xf32> to vector<4x1xf32>
    %10 = vector.shape_cast %9 : vector<4x1xf32> to vector<4x1x1xf32>
    %cst_6 = arith.constant 0.001953125 : f32
    %11 = vector.broadcast %cst_6 : f32 to vector<4x1x1xf32>
    %12 = arith.mulf %5, %11 : vector<4x1x1xf32>
    %cst_7 = arith.constant 0.001953125 : f32
    %13 = vector.broadcast %cst_7 : f32 to vector<4x1x1xf32>
    %14 = arith.mulf %10, %13 : vector<4x1x1xf32>
    %15 = arith.mulf %12, %12 : vector<4x1x1xf32>
    %16 = arith.subf %14, %15 : vector<4x1x1xf32>
    %17 = vector.broadcast %12 : vector<4x1x1xf32> to vector<4x2x256xf32>
    %18 = arith.subf %1, %17 : vector<4x2x256xf32>
    %cst_8 = arith.constant 9.99999974E-6 : f32
    %19 = vector.broadcast %cst_8 : f32 to vector<4x1x1xf32>
    %20 = arith.addf %16, %19 : vector<4x1x1xf32>
    %21 = math.rsqrt %20 : vector<4x1x1xf32>
    %22 = vector.broadcast %21 : vector<4x1x1xf32> to vector<4x2x256xf32>
    %23 = arith.mulf %18, %22 : vector<4x2x256xf32>
    %c0_9 = arith.constant 0 : index
    %c0_10 = arith.constant 0 : index
    %c0_11 = arith.constant 0 : index
    %24 = vector.load %arg2[%c0_9, %c0_10, %c0_11] : memref<4x2x1xf32, #tpu.memory_space<vmem>>, vector<4x2x1xf32>
    %25 = vector.broadcast %24 : vector<4x2x1xf32> to vector<4x2x256xf32>
    %26 = arith.mulf %23, %25 : vector<4x2x256xf32>
    %c0_12 = arith.constant 0 : index
    %c0_13 = arith.constant 0 : index
    %c0_14 = arith.constant 0 : index
    %27 = vector.load %arg3[%c0_12, %c0_13, %c0_14] : memref<4x2x1xf32, #tpu.memory_space<vmem>>, vector<4x2x1xf32>
    %28 = vector.broadcast %27 : vector<4x2x1xf32> to vector<4x2x256xf32>
    %29 = arith.addf %26, %28 : vector<4x2x256xf32>
    %30 = arith.negf %29 : vector<4x2x256xf32>
    %31 = math.exp %30 : vector<4x2x256xf32>
    %cst_15 = arith.constant 1.000000e+00 : f32
    %32 = vector.broadcast %cst_15 : f32 to vector<4x2x256xf32>
    %33 = arith.addf %32, %31 : vector<4x2x256xf32>
    %34 = arith.divf %32, %33 : vector<4x2x256xf32>
    %35 = arith.mulf %29, %34 : vector<4x2x256xf32>
    %36 = arith.truncf %35 : vector<4x2x256xf32> to vector<4x2x256xbf16>
    %c0_16 = arith.constant 0 : index
    %c0_17 = arith.constant 0 : index
    %c0_18 = arith.constant 0 : index
    %c0_19 = arith.constant 0 : index
    %37 = vector.load %arg4[%c0_16, %c0_17, %c0_18, %c0_19] : memref<1x4x2x256xbf16, #tpu.memory_space<vmem>>, vector<1x4x2x256xbf16>
    %38 = vector.shape_cast %37 : vector<1x4x2x256xbf16> to vector<4x2x256xbf16>
    %39 = vector.shape_cast %36 : vector<4x2x256xbf16> to vector<1x4x2x256xbf16>
    tpu.vector_store %arg4[%c0_16, %c0_17, %c0_18, %c0_19], %39 {strides = array<i32>} : memref<1x4x2x256xbf16, #tpu.memory_space<vmem>>, vector<1x4x2x256xbf16>,
    return
  }
  func.func @transform_0(%arg0: i32) -> (i32, i32, i32, i32) {
    %c0_i32 = arith.constant 0 : i32
    %c0_i32_0 = arith.constant 0 : i32
    %c0_i32_1 = arith.constant 0 : i32
    %c0_i32_2 = arith.constant 0 : i32
    return %arg0, %c0_i32, %c0_i32_0, %c0_i32_1 : i32, i32, i32, i32
  }
  func.func @transform_1(%arg0: i32) -> (i32, i32, i32) {
    %c0_i32 = arith.constant 0 : i32
    %c0_i32_0 = arith.constant 0 : i32
    %c0_i32_1 = arith.constant 0 : i32
    %c0_i32_2 = arith.constant 0 : i32
    return %c0_i32, %c0_i32_0, %c0_i32_1 : i32, i32, i32
  }
  func.func @transform_2(%arg0: i32) -> (i32, i32, i32) {
    %c0_i32 = arith.constant 0 : i32
    %c0_i32_0 = arith.constant 0 : i32
    %c0_i32_1 = arith.constant 0 : i32
    %c0_i32_2 = arith.constant 0 : i32
    return %c0_i32, %c0_i32_0, %c0_i32_1 : i32, i32, i32
  }
  func.func @transform_3(%arg0: i32) -> (i32, i32, i32, i32) {
    %c0_i32 = arith.constant 0 : i32
    %c0_i32_0 = arith.constant 0 : i32
    %c0_i32_1 = arith.constant 0 : i32
    %c0_i32_2 = arith.constant 0 : i32
    return %arg0, %c0_i32, %c0_i32_0, %c0_i32_1 : i32, i32, i32, i32
  }
}

</mosaic_0001>

<bundles_post_ra>
// kernel: tpu_custom_call.1
= control target key start
LH: loop header
LB: loop body
LE: loop exit
PB: predicated region body
PF: predicated region fallthrough
CT: control target
= control target key end

     0   :  { %8 = vsyncpa [#allocation3], 0  ;;  %s1262_s0 = inlined_call_operand.hbm [shape: f32[2,4,2,256], index: 0, kind: input, shape index: {}]   ;;  %s1263_s1 = inlined_call_operand.vmem [shape: f32[4,2,1], index: 1, kind: input, shape index: {}]   ;;  %s1264_s2 = inlined_call_operand.vmem [shape: f32[4,2,1], index: 2, kind: input, shape index: {}]   ;;  %s1265_s3 = inlined_call_operand.hbm [shape: bf16[2,4,2,256], index: 3, kind: output, shape index: {}]  }
   0x1   :  { %10 = vsyncpa [#allocation3 + $0x1], 0 }
   0x2   :  { %11 = vsyncpa [#allocation4], 0 }
   0x3   :  { %13 = vsyncpa [#allocation4 + $0x1], 0  ;;  %s1005_s12 = smov 0   ;;  %s1007_s13 = smov 0  }
   0x4   :  { %s1009_s14 = smov 0   ;;  %s1011_s15 = smov 0  }
   0x5 LB: > { %s1026_s16 = sadd.s32 4294967295, %s973_s15   ;;  %s769_s17 = sadd.s32 4294967294, %s973_s15   ;;  %s973_s15 = sphi %s1011_s15, %s1278_s15   ;;  %s969_s14 = sphi %s1009_s14, %s1277_s14   ;;  %s965_s13 = sphi %s1007_s13, %s1276_s13   ;;  %s961_s12 = sphi %s1005_s12, %s1275_s12  }
   0x6   : > { %s1030_s18 = sadd.s32 1, %s973_s15   ;;  %s26_s19 = sadd.s32 1, %s969_s14 }
   0x7   : > { %s23_s20 = ssub.s32 %s973_s15, %s1030_s18  ;;  %p33_p0 = scmp.ne.s32.totalorder %s969_s14, %s965_s13 }
   0x8   : > { %p24_p1 = scmp.eq.s32.totalorder %s23_s20, 0  ;;  %p34_p2 = scmp.eq.s32.totalorder %s973_s15, 0 }
   0x9   : > { %p39_p3 = scmp.ne.s32.totalorder %s965_s13, %s961_s12  ;;  %p40_p4 = scmp.eq.s32.totalorder %s1026_s16, 0 }
   0xa   : > { %s1042_s21 = scalar_select %p24_p1, %s969_s14, %s26_s19  }
   0xb   : > { %p1044_p5 = por %p34_p2, %p33_p0  ;;  %p1048_p6 = por %p40_p4, %p39_p3 }
   0xc   : > { %p105_p7 = scmp.eq.s32.totalorder %s1026_s16, 1  ;;  %p111_p8 = scmp.eq.s32.totalorder %s769_s17, 1 }
   0xd   : > { %p809_p10 = scmp.lt.s32.totalorder %s973_s15, 2  ;;  %s137_s26 = sand.u32 1, %s969_s14  }
   0xe   : > { %p1055_p11 = por %p105_p7, %p33_p0  ;;  %p1059_p12 = por %p111_p8, %p39_p3 }
   0xf   : > { %s795_s27 = sshll.u32 %s973_s15, 8  ;;  %s772_s28 = sshll.u32 %s137_s26, 4 }
  0x10   : > { %s1269_s24 = scalar_select %p1055_p11, 1, 0 }
  0x11   : > { %s1270_s25 = scalar_select %p1059_p12, 1, 0 }
  0x12   : > { %s1068_s4 = scalar_lea.hbm %s1262_s0, %s795_s27  ;;  %s141_s5 = scalar_lea.vmem [#allocation2], %s772_s28 }
  0x13   : > { %s148_s6 = sshll.u32 %s141_s5, 4  ;;  %p1072_p13 = pnand %p809_p10, %p1044_p5  ;;  %s1076_s6 = int_to_ptr.vmem [resolvable:$true] %s148_s6 }
  0x14   : > { %s1078_s8 = scalar_lea.sflag [#allocation3], %s137_s26  ;;  %s877_s9 = scalar_lea.hbm %s1068_s4, 256 }
  0x15   : > { %p878_p0 = scmp.ne.s32.totalorder %s1068_s4, %s877_s9  ;;  %p879_p1 = pneg %p1072_p13 }
  0x16   : > { %s882_s17 = scalar_lea.hbm %s1262_s0, 512  ;;  %p883_p4 = scmp.lt.u32.totalorder %s1068_s4, %s1262_s0 }
  0x17   : > { %p880_p2 = pnand %p879_p1, %p878_p0  ;;  %p884_p5 = scmp.lt.u32.totalorder %s882_s17, %s877_s9 }
  0x18   : > { %p886_p8 = scmp.lt.u32.totalorder %s877_s9, %s1068_s4 }
  0x19   : > { %p881_p3 = pneg %p880_p2  ;;  %p885_p7 = por %p884_p5, %p883_p4 }
  0x1b   : > { %p887_p10 = por %p886_p8, %p885_p7 }
  0x1d   : > { %p888_p9 = pnand %p887_p10, %p881_p3 }
  0x1f   : > { %891 = shalt.err (!%p888_p9)
}
  0x20   : > { %s892_s22 = scalar_lea.vmem %s1076_s6, 256  ;;  %s975_s26 = smov [#allocation2]  }
  0x21   : > { %p893_p0 = scmp.ne.s32.totalorder %s1076_s6, %s892_s22  ;;  %s897_s27 = sshll.u32 %s975_s26, 4  ;;  %s898_s27 = int_to_ptr.vmem [resolvable:$false] %s897_s27 }
  0x22   : > { %s899_s28 = scalar_lea.vmem %s898_s27, 512  ;;  %p900_p11 = scmp.lt.s32.totalorder %s1076_s6, %s898_s27 }
  0x23   : > { %p895_p2 = pnand %p893_p0, %p879_p1  ;;  %p901_p4 = scmp.lt.s32.totalorder %s899_s28, %s892_s22 }
  0x25   : > { %p896_p12 = pneg %p895_p2  ;;  %p902_p5 = por %p901_p4, %p900_p11 }
  0x27   : > { %p903_p7 = pnand %p902_p5, %p896_p12 }
  0x29   : > { %906 = shalt.err (!%p903_p7)
}
  0x2a   : > { %s976_s29 = smov 64   ;;  %s977_s30 = smov 4  }
  0x2b   : > { %804 = dma.hbm_to_vmem [thread:$0]  (!%p1072_p13), %s1068_s4, 256, %s1076_s6, %s1078_s8, %s976_s29, %s976_s29, %s977_s30  }
  0x2c   : > { %p775_p9 = scmp.ge.s32.totalorder %s973_s15, 1  ;;  %p156_p1 = scmp.lt.s32.totalorder %s973_s15, 3 }
  0x2e   : > { %p157_p3 = pnand %p775_p9, %p156_p1 }
  0x2f   : > { %s1109_s5 = sand.u32 (!%p157_p3), 1, %s965_s13  }
  0x30   : > { %160 = sbr.rel (%p157_p3) target bundleno = 312 (0x138), region = 32  ;;  %s776_s9 = sshll.u32 (!%p157_p3), %s1109_s5, 4 }
  0x31   : > { %s163_s10 = scalar_lea.sflag (!%p157_p3), [#allocation3], %s1109_s5  ;;  %s166_s11 = scalar_lea.vmem (!%p157_p3), [#allocation2], %s776_s9 }
  0x37   : > { %952 = dma.done.wait (%p1048_p6), %s163_s10, 256  }
  0x38   : > { %954 = vsyncadd (%p1048_p6), %s163_s10, 4294967040  ;;  %v200_v0 = vlaneseq  ;;  %v978_v1 = vmov 1983009808   ;;  %v979_v3 = vmov 0   ;;  %vm237_vm0 = vcmask 1041408   ;;  %s796_s23 = sshll.u32 %s1026_s16, 7 }
  0x39   : > { %v198_v2 = vunpack.c.l.s4 %v978_v1  ;;  %852 = vset.pattern.permute.xlu1 %v979_v3  ;;  %851 = vset.pattern.permute.xlu0 %v979_v3  ;;  %v1122_v7 = vld [vmem:[%s166_s11 + $0x8] sm:$0xf]  ;;  %v1124_v8 = vld [vmem:[%s166_s11] sm:$0xf]  ;;  %v1126_v9 = vld [vmem:[%s166_s11 + $0xc] sm:$0xf]  ;;  %s1216_s17 = scalar_lea.hbm %s1265_s3, %s796_s23 }
  0x3a   : > { %v1117_v4 = vshrl.u32 %v200_v0, 7  ;;  %v1134_v13 = vld [vmem:[%s166_s11 + $0x4] sm:$0xf]  ;;  %v286_v14 = vmul.f32 %v1124_v8, %v1124_v8  ;;  %v289_v17 = vmul.f32 %v1126_v9, %v1126_v9  ;;  %v288_v18 = vmul.f32 %v1122_v7, %v1122_v7  ;;  %v415_v55 = vld [vmem:[%s1263_s1 + $0x2] sm:$0x3]  ;;  %s777_s11 = sshll.u32 %s1109_s5, 3 }
  0x3b   : > { %v199_v5 = vunpack.c.0.s8 %v198_v2  ;;  %v287_v16 = vmul.f32 %v1134_v13, %v1134_v13  ;;  %v416_v56 = vld [vmem:[%s1263_s1 + $0x4] sm:$0x3]  ;;  %v414_v57 = vld [vmem:[%s1263_s1] sm:$0x3]  ;;  %v417_v58 = vld [vmem:[%s1263_s1 + $0x6] sm:$0x3] }
  0x3c   : > { %v470_v59 = vld [vmem:[%s1264_s2] sm:$0x3]  ;;  %v471_v60 = vld [vmem:[%s1264_s2 + $0x2] sm:$0x3]  ;;  %v472_v61 = vld [vmem:[%s1264_s2 + $0x4] sm:$0x3] }
  0x3d   : > { %v1120_v6 = vsub.s32 %v199_v5, %v1117_v4  ;;  %v473_v62 = vld [vmem:[%s1264_s2 + $0x6] sm:$0x3]  ;;  %s188_s4 = scalar_lea.vmem [#allocation5], %s777_s11  ;;  %s683_s16 = scalar_lea.sflag [#allocation4], %s1109_s5 }
  0x3e   : > { %s696_s6 = sshll.u32 %s188_s4, 4  ;;  %p1272_p11 = scmp.ne.s32.totalorder %s1269_s24, 0  ;;  %s1218_s6 = int_to_ptr.vmem [resolvable:$true] %s696_s6 }
  0x3f   : > { %v219_v10 = vrot.slane %v1122_v7, %v1120_v6  ;;  %v203_v11 = vrot.slane %v1124_v8, %v1120_v6  ;;  %v227_v12 = vrot.slane %v1126_v9, %v1120_v6  ;;  %v211_v15 = vrot.slane %v1134_v13, %v1120_v6  ;;  %s907_s19 = scalar_lea.vmem %s1218_s6, 128  ;;  %s982_s20 = smov [#allocation5]  }
  0x40   : > { %v308_v29 = vrot.slane %v287_v16, %v1120_v6  ;;  %v300_v30 = vrot.slane %v286_v14, %v1120_v6  ;;  %v324_v39 = vrot.slane %v289_v17, %v1120_v6  ;;  %v316_v40 = vrot.slane %v288_v18, %v1120_v6  ;;  %p908_p6 = scmp.ne.s32.totalorder %s1218_s6, %s907_s19  ;;  %s911_s22 = sshll.u32 %s982_s20, 4  ;;  %s912_s22 = int_to_ptr.vmem [resolvable:$false] %s911_s22 }
  0x41   : > { %v220_v19 = vcombine.high %v219_v10, %v219_v10  ;;  %v248_v20 = vsel %vm237_vm0, %v219_v10, 0.0  ;;  %v204_v21 = vcombine.high %v203_v11, %v203_v11  ;;  %v238_v22 = vsel %vm237_vm0, %v203_v11, 0.0  ;;  %s913_s26 = scalar_lea.vmem %s912_s22, 256  ;;  %p914_p8 = scmp.lt.s32.totalorder %s1218_s6, %s912_s22 }
  0x42   : > { %v228_v23 = vcombine.high %v227_v12, %v227_v12  ;;  %v253_v24 = vsel %vm237_vm0, %v227_v12, 0.0  ;;  %v212_v25 = vcombine.high %v211_v15, %v211_v15  ;;  %v243_v26 = vsel %vm237_vm0, %v211_v15, 0.0  ;;  %p909_p12 = pnand %p908_p6, %p1272_p11  ;;  %p915_p10 = scmp.lt.s32.totalorder %s913_s26, %s907_s19 }
  0x43   : > { %v249_v27 = vsel %vm237_vm0, %v220_v19, 0.0  ;;  %v239_v28 = vsel %vm237_vm0, %v204_v21, 0.0  ;;  %v309_v37 = vcombine.high %v308_v29, %v308_v29  ;;  %v301_v38 = vcombine.high %v300_v30, %v300_v30 }
  0x44   : > { %v250_v31 = vadd.f32 %v249_v27, %v248_v20  ;;  %v240_v32 = vadd.f32 %v239_v28, %v238_v22  ;;  %v254_v33 = vsel %vm237_vm0, %v228_v23, 0.0  ;;  %v244_v34 = vsel %vm237_vm0, %v212_v25, 0.0  ;;  %p910_p13 = pneg %p909_p12  ;;  %p916_p0 = por %p915_p10, %p914_p8 }
  0x45   : > { %v255_v35 = vadd.f32 %v254_v33, %v253_v24  ;;  %v245_v36 = vadd.f32 %v244_v34, %v243_v26  ;;  %v339_v41 = vsel %vm237_vm0, %v308_v29, 0.0  ;;  %v340_v42 = vsel %vm237_vm0, %v309_v37, 0.0 }
  0x46   : > { %251 = vadd.xlane.f32.xlu1 %v250_v31  ;;  %241 = vadd.xlane.f32.xlu0 %v240_v32  ;;  %v334_v43 = vsel %vm237_vm0, %v300_v30, 0.0  ;;  %v335_v44 = vsel %vm237_vm0, %v301_v38, 0.0  ;;  %v325_v45 = vcombine.high %v324_v39, %v324_v39  ;;  %v317_v46 = vcombine.high %v316_v40, %v316_v40  ;;  %p917_p2 = pnand %p916_p0, %p910_p13 }
  0x47   : > { %v341_v47 = vadd.f32 %v340_v42, %v339_v41  ;;  %v336_v48 = vadd.f32 %v335_v44, %v334_v43  ;;  %v349_v49 = vsel %vm237_vm0, %v324_v39, 0.0  ;;  %v344_v51 = vsel %vm237_vm0, %v316_v40, 0.0 }
  0x48   : > { %v350_v50 = vsel %vm237_vm0, %v325_v45, 0.0  ;;  %v345_v52 = vsel %vm237_vm0, %v317_v46, 0.0 }
  0x49   : > { %v351_v53 = vadd.f32 %v350_v50, %v349_v49  ;;  %v346_v54 = vadd.f32 %v345_v52, %v344_v51 }
  0x4a   : > { %256 = vadd.xlane.f32.xlu1 %v255_v35  ;;  %246 = vadd.xlane.f32.xlu0 %v245_v36 }
  0x4e   : > { %342 = vadd.xlane.f32.xlu1 %v341_v47  ;;  %337 = vadd.xlane.f32.xlu0 %v336_v48 }
  0x52   : > { %352 = vadd.xlane.f32.xlu1 %v351_v53  ;;  %347 = vadd.xlane.f32.xlu0 %v346_v54 }
  0x63   : > { %424 = vperm.xlu1 %852, %v415_v55  }
  0x67   : > { %428 = vperm.xlu1 %852, %v416_v56  }
  0x68   : > { %420 = vperm.xlu0 %851, %v414_v57  }
  0x6b   : > { %432 = vperm.xlu1 %852, %v417_v58  }
  0x6f   : > { %476 = vperm.xlu1 %852, %v470_v59  }
  0x73   : > { %480 = vperm.xlu1 %852, %v471_v60  }
  0x77   : > { %484 = vperm.xlu1 %852, %v472_v61  }
  0x7b   : > { %488 = vperm.xlu1 %852, %v473_v62  }
  0xd3   : > { %v252_v63 = vpop.xlane.xlu1 %251  ;;  %v242_v0 = vpop.xlane.xlu0 %241 }
  0xd4   : > { %v272_v1 = vsel %vm237_vm0, %v252_v63, 0.0  ;;  %v258_v2 = vsel %vm237_vm0, %v242_v0, 0.0 }
  0xd5   : > { %v273_v3 = vrot.slane %v272_v1, 4  ;;  %v259_v5 = vrot.slane %v258_v2, 4 }
  0xd7   : > { %v274_v10 = vadd.f32 %v273_v3, %v272_v1  ;;  %v260_v11 = vadd.f32 %v259_v5, %v258_v2  ;;  %v257_v12 = vpop.xlane.xlu1 %256  ;;  %v247_v14 = vpop.xlane.xlu0 %246 }
  0xd8   : > { %v279_v15 = vsel %vm237_vm0, %v257_v12, 0.0  ;;  %v265_v16 = vsel %vm237_vm0, %v247_v14, 0.0 }
  0xd9   : > { %v275_v17 = vrot.slane %v274_v10, 2  ;;  %v261_v18 = vrot.slane %v260_v11, 2  ;;  %v280_v19 = vrot.slane %v279_v15, 4  ;;  %v266_v20 = vrot.slane %v265_v16, 4 }
  0xdb   : > { %v262_v21 = vadd.f32 %v261_v18, %v260_v11  ;;  %v281_v22 = vadd.f32 %v280_v19, %v279_v15  ;;  %v267_v23 = vadd.f32 %v266_v20, %v265_v16  ;;  %v343_v24 = vpop.xlane.xlu1 %342  ;;  %v338_v25 = vpop.xlane.xlu0 %337  ;;  %v276_v28 = vadd.f32 %v275_v17, %v274_v10 }
  0xdc   : > { %v361_v26 = vsel %vm237_vm0, %v343_v24, 0.0  ;;  %v354_v27 = vsel %vm237_vm0, %v338_v25, 0.0 }
  0xdd   : > { %v263_v29 = vrot.slane %v262_v21, 1  ;;  %v282_v30 = vrot.slane %v281_v22, 2  ;;  %v268_v31 = vrot.slane %v267_v23, 2  ;;  %v362_v32 = vrot.slane %v361_v26, 4 }
  0xde   : > { %v355_v33 = vrot.slane %v354_v27, 4  ;;  %v277_v42 = vrot.slane %v276_v28, 1 }
  0xdf   : > { %v283_v34 = vadd.f32 %v282_v30, %v281_v22  ;;  %v269_v35 = vadd.f32 %v268_v31, %v267_v23  ;;  %v353_v36 = vpop.xlane.xlu1 %352  ;;  %v348_v37 = vpop.xlane.xlu0 %347  ;;  %v363_v38 = vadd.f32 %v362_v32, %v361_v26  ;;  %v264_v43 = vadd.f32 %v263_v29, %v262_v21 }
  0xe0   : > { %v356_v39 = vadd.f32 %v355_v33, %v354_v27  ;;  %v375_v40 = vsel %vm237_vm0, %v353_v36, 0.0  ;;  %v368_v41 = vsel %vm237_vm0, %v348_v37, 0.0  ;;  %v278_v56 = vadd.f32 %v277_v42, %v276_v28 }
  0xe1   : > { %v284_v44 = vrot.slane %v283_v34, 1  ;;  %v270_v45 = vrot.slane %v269_v35, 1  ;;  %v364_v46 = vrot.slane %v363_v38, 2  ;;  %v376_v48 = vrot.slane %v375_v40, 4 }
  0xe2   : > { %v357_v47 = vrot.slane %v356_v39, 2  ;;  %v369_v49 = vrot.slane %v368_v41, 4  ;;  %v382_v57 = vmul.f32 0.001953125, %v264_v43  ;;  %v384_v10 = vmul.f32 0.001953125, %v278_v56 }
  0xe3   : > { %v271_v50 = vadd.f32 %v270_v45, %v269_v35  ;;  %v425_v51 = vpop.permute.xlu1 %424  ;;  %v365_v52 = vadd.f32 %v364_v46, %v363_v38  ;;  %v377_v54 = vadd.f32 %v376_v48, %v375_v40  ;;  %v285_v58 = vadd.f32 %v284_v44, %v283_v34 }
  0xe4   : > { %v358_v53 = vadd.f32 %v357_v47, %v356_v39  ;;  %v370_v55 = vadd.f32 %v369_v49, %v368_v41  ;;  %v390_v11 = vmul.f32 %v382_v57, %v382_v57  ;;  %v392_v24 = vmul.f32 %v384_v10, %v384_v10 }
  0xe5   : > { %v383_v59 = vmul.f32 0.001953125, %v271_v50  ;;  %v366_v60 = vrot.slane %v365_v52, 1  ;;  %v378_v62 = vrot.slane %v377_v54, 2  ;;  %v385_v12 = vmul.f32 0.001953125, %v285_v58 }
  0xe6   : > { %v359_v61 = vrot.slane %v358_v53, 1  ;;  %v371_v63 = vrot.slane %v370_v55, 2  ;;  %v980_v30 = vmov 269488144   ;;  %v398_v44 = vsub.f32 %v1124_v8, %v382_v57 }
  0xe7   : > { %v1198_v0 = vpop.permute.xlu1 %428  ;;  %v367_v1 = vadd.f32 %v366_v60, %v365_v52  ;;  %v379_v3 = vadd.f32 %v378_v62, %v377_v54  ;;  %v391_v14 = vmul.f32 %v383_v59, %v383_v59  ;;  %v393_v25 = vmul.f32 %v385_v12, %v385_v12  ;;  %v421_v40 = vpop.permute.xlu0 %420 }
  0xe8   : > { %v360_v2 = vadd.f32 %v359_v61, %v358_v53  ;;  %v372_v5 = vadd.f32 %v371_v63, %v370_v55  ;;  %v435_v31 = vunpack.c.l.s4 %v980_v30  ;;  %v399_v42 = vsub.f32 %v1134_v13, %v383_v59 }
  0xe9   : > { %v387_v15 = vmul.f32 0.001953125, %v367_v1  ;;  %v380_v17 = vrot.slane %v379_v3, 1  ;;  %v401_v52 = vsub.f32 %v1126_v9, %v385_v12  ;;  %v400_v55 = vsub.f32 %v1122_v7, %v384_v10 }
  0xea   : > { %v386_v16 = vmul.f32 0.001953125, %v360_v2  ;;  %v373_v18 = vrot.slane %v372_v5, 1  ;;  %v436_v37 = vunpack.c.0.s8 %v435_v31 }
  0xeb   : > { %v433_v19 = vpop.permute.xlu1 %432  ;;  %v395_v20 = vsub.f32 %v387_v15, %v391_v14  ;;  %v381_v22 = vadd.f32 %v380_v17, %v379_v3 }
  0xec   : > { %v394_v21 = vsub.f32 %v386_v16, %v390_v11  ;;  %v374_v23 = vadd.f32 %v373_v18, %v372_v5  ;;  %v439_v39 = vsub.s32 %v436_v37, %v1117_v4 }
  0xed   : > { %v403_v26 = vadd.f32 1e-05, %v395_v20  ;;  %v389_v28 = vmul.f32 0.001953125, %v381_v22 }
  0xee   : > { %v402_v27 = vadd.f32 1e-05, %v394_v21  ;;  %v388_v29 = vmul.f32 0.001953125, %v374_v23  ;;  %v440_v45 = vrot.slane %v421_v40, %v439_v39  ;;  %v447_v48 = vrot.slane %v425_v51, %v439_v39 }
  0xef   : > { %v477_v32 = vpop.permute.xlu1 %476  ;;  %853 = vrsqrt.f32 %v403_v26  ;;  %v397_v33 = vsub.f32 %v389_v28, %v393_v25  ;;  %v461_v59 = vrot.slane %v433_v19, %v439_v39  ;;  %v454_v57 = vrot.slane %v1198_v0, %v439_v39 }
  0xf0   : > { %v396_v34 = vsub.f32 %v388_v29, %v392_v24  ;;  %855 = vrsqrt.f32 %v402_v27  ;;  %v496_v56 = vrot.slane %v477_v32, %v439_v39  ;;  %v981_v21 = vmov 1966171168  }
  0xf1   : > { %v405_v35 = vadd.f32 1e-05, %v397_v33  ;;  %v616_v22 = vunpack.c.l.s4 %v981_v21 }
  0xf2   : > { %v404_v36 = vadd.f32 1e-05, %v396_v34 }
  0xf3   : > { %v481_v38 = vpop.permute.xlu1 %480  ;;  %857 = vrsqrt.f32 %v405_v35  ;;  %v617_v25 = vunpack.c.0.s8 %v616_v22 }
  0xf4   : > { %859 = vrsqrt.f32 %v404_v36  ;;  %v503_v53 = vrot.slane %v481_v38, %v439_v39 }
  0xf5   : > { %v620_v32 = vsub.s32 %v617_v25, %v1117_v4 }
  0xf7   : > { %v485_v41 = vpop.permute.xlu1 %484 }
  0xf8   : > { %v510_v9 = vrot.slane %v485_v41, %v439_v39 }
  0xf9   : > { %v854_v43 = vpop.eup %853 }
  0xfa   : > { %v856_v46 = vpop.eup %855  ;;  %v411_v47 = vmul.f32 %v854_v43, %v399_v42 }
  0xfb   : > { %v410_v49 = vmul.f32 %v856_v46, %v398_v44  ;;  %v489_v60 = vpop.permute.xlu1 %488 }
  0xfc   : > { %v467_v50 = vmul.f32 %v447_v48, %v411_v47  ;;  %v517_v2 = vrot.slane %v489_v60, %v439_v39 }
  0xfd   : > { %v858_v54 = vpop.eup %857  ;;  %v466_v58 = vmul.f32 %v440_v45, %v410_v49 }
  0xfe   : > { %v860_v61 = vpop.eup %859  ;;  %v413_v13 = vmul.f32 %v858_v54, %v401_v52  ;;  %v523_v62 = vadd.f32 %v503_v53, %v467_v50 }
  0xff   : > { %v412_v8 = vmul.f32 %v860_v61, %v400_v55  ;;  %v522_v63 = vadd.f32 %v496_v56, %v466_v58 }
 0x100   : > { %v469_v51 = vmul.f32 %v461_v59, %v413_v13  ;;  %v779_v1 = vmul.f32 -1.442695, %v523_v62 }
 0x101   : > { %v468_v3 = vmul.f32 %v454_v57, %v412_v8  ;;  %v778_v5 = vmul.f32 -1.442695, %v522_v63 }
 0x102   : > { %861 = vpow2.f32 %v779_v1  ;;  %v525_v11 = vadd.f32 %v517_v2, %v469_v51 }
 0x103   : > { %v524_v7 = vadd.f32 %v510_v9, %v468_v3  ;;  %863 = vpow2.f32 %v778_v5 }
 0x104   : > { %v781_v10 = vmul.f32 -1.442695, %v525_v11 }
 0x105   : > { %v780_v12 = vmul.f32 -1.442695, %v524_v7 }
 0x106   : > { %865 = vpow2.f32 %v781_v10 }
 0x107   : > { %867 = vpow2.f32 %v780_v12 }
 0x10c   : > { %v862_v14 = vpop.eup %861 }
 0x10d   : > { %v864_v15 = vpop.eup %863  ;;  %v539_v16 = vadd.f32 1.0, %v862_v14 }
 0x10e   : > { %v538_v17 = vadd.f32 1.0, %v864_v15 }
 0x10f   : > { %869 = vrcp.f32 %v539_v16 }
 0x110   : > { %v866_v0 = vpop.eup %865  ;;  %871 = vrcp.f32 %v538_v17 }
 0x111   : > { %v868_v18 = vpop.eup %867  ;;  %v541_v19 = vadd.f32 1.0, %v866_v0 }
 0x112   : > { %v540_v20 = vadd.f32 1.0, %v868_v18 }
 0x113   : > { %873 = vrcp.f32 %v541_v19 }
 0x114   : > { %875 = vrcp.f32 %v540_v20 }
 0x119   : > { %v870_v23 = vpop.eup %869 }
 0x11a   : > { %v872_v24 = vpop.eup %871  ;;  %v551_v26 = vmul.f32 %v870_v23, %v523_v62 }
 0x11b   : > { %v550_v27 = vmul.f32 %v872_v24, %v522_v63 }
 0x11c   : > { %v572_v28 = vrot.slane %v551_v26, %v1120_v6 }
 0x11d   : > { %v874_v29 = vpop.eup %873  ;;  %v564_v30 = vrot.slane %v550_v27, %v1120_v6 }
 0x11e   : > { %v876_v31 = vpop.eup %875  ;;  %v573_v33 = vcombine.high %v572_v28, %v572_v28  ;;  %v553_v34 = vmul.f32 %v874_v29, %v525_v11 }
 0x11f   : > { %v552_v35 = vmul.f32 %v876_v31, %v524_v7  ;;  %v565_v36 = vcombine.high %v564_v30, %v564_v30 }
 0x120   : > { %v783_v37 = vpack.c.bf16 %v573_v33, %v572_v28  ;;  %v588_v38 = vrot.slane %v553_v34, %v1120_v6 }
 0x121   : > { %v580_v39 = vrot.slane %v552_v35, %v1120_v6  ;;  %v782_v40 = vpack.c.bf16 %v565_v36, %v564_v30 }
 0x122   : > { %v636_v41 = vrot.slane %v783_v37, %v620_v32  ;;  %v589_v42 = vcombine.high %v588_v38, %v588_v38 }
 0x123   : > { %v581_v43 = vcombine.high %v580_v39, %v580_v39  ;;  %v621_v44 = vrot.slane %v782_v40, %v620_v32 }
 0x124   : > { %787 = vst.sshfl [vmem:[%s188_s4 + $0x2] sm:$0x5 pattern:$0x73625140] %v636_v41  ;;  %v785_v4 = vpack.c.bf16 %v589_v42, %v588_v38 }
 0x125   : > { %v784_v45 = vpack.c.bf16 %v581_v43, %v580_v39  ;;  %786 = vst.sshfl [vmem:[%s188_s4] sm:$0x5 pattern:$0x73625140] %v621_v44 }
 0x126   : > { %v666_v46 = vrot.slane %v785_v4, %v620_v32 }
 0x127   : > { %v651_v6 = vrot.slane %v784_v45, %v620_v32 }
 0x128   : > { %789 = vst.sshfl [vmem:[%s188_s4 + $0x6] sm:$0x5 pattern:$0x73625140] %v666_v46 }
 0x129   : > { %788 = vst.sshfl [vmem:[%s188_s4 + $0x4] sm:$0x5 pattern:$0x73625140] %v651_v6 }
 0x12a   : > { %920 = shalt.err (!%p917_p2)
}
 0x12b   : > { %s921_s27 = scalar_lea.hbm %s1216_s17, 128  ;;  %s925_s30 = scalar_lea.hbm %s1265_s3, 256 }
 0x12c   : > { %p922_p4 = scmp.ne.s32.totalorder %s1216_s17, %s921_s27  ;;  %p926_p9 = scmp.lt.u32.totalorder %s1216_s17, %s1265_s3 }
 0x12d   : > { %p927_p1 = scmp.lt.u32.totalorder %s925_s30, %s921_s27  ;;  %p929_p6 = scmp.lt.u32.totalorder %s921_s27, %s1216_s17 }
 0x12e   : > { %p923_p5 = pnand %p922_p4, %p1272_p11 }
 0x12f   : > { %p928_p3 = por %p927_p1, %p926_p9 }
 0x130   : > { %p924_p7 = pneg %p923_p5 }
 0x131   : > { %p930_p12 = por %p929_p6, %p928_p3 }
 0x133   : > { %p931_p13 = pnand %p930_p12, %p924_p7 }
 0x135   : > { %934 = shalt.err (!%p931_p13)
}
 0x136   : > { %s983_s11 = smov 32   ;;  %s984_s23 = smov 2  }
 0x137   : > { %799 = dma.vmem_to_hbm [thread:$0]  (%p1272_p11), %s1218_s6, 128, %s1216_s17, %s683_s16, %s983_s11, %s983_s11, %s984_s23  }
 0x138 PF: > { %s711_s4 = sand.u32 1, %s961_s12   ;;  %p1273_p8 = scmp.ne.s32.totalorder %s1270_s25, 0 }
 0x139   : > { %p1274_p10 = scmp.ge.s32.totalorder %s973_s15, 2  ;;  %s712_s7 = scalar_lea.sflag [#allocation4], %s711_s4 }
 0x13b   : > { %p806_p0 = pnand %p1274_p10, %p1273_p8 }
 0x13d   : > { %956 = dma.done.wait (!%p806_p0), %s712_s7, 128  }
 0x13e   : > { %958 = vsyncadd (!%p806_p0), %s712_s7, 4294967168  ;;  %p16_p2 = scmp.ge.s32.totalorder %s1030_s18, 4   ;;  %s1275_s12 = smov %s965_s13 }
 0x13f   : > { %s1276_s13 = smov %s969_s14  ;;  %s1277_s14 = smov %s1042_s21 }
 0x140   : > { %s1278_s15 = smov %s1030_s18  ;;  %18 = sbr.rel (!%p16_p2) target bundleno = 5 (0x5), region = 77 }
 0x147   :  { %717 = vsyncpa [#allocation3], 1 }
 0x148   :  { %719 = vsyncpa [#allocation3 + $0x1], 1 }
 0x149   :  { %720 = vsyncpa [#allocation4], 1 }
 0x14a   :  { %722 = vsyncpa [#allocation4 + $0x1], 1 }

</bundles_post_ra>
